<compile_context>
chip_gen: v7x
topology: tpu7x:2x2x1
jax: 0.10.0
libtpu: 0.0.40
codegen_flags: <defaults>
</compile_context>

<pallas_src>
import functools

import jax
import jax.numpy as jnp
from jax import lax
from jax.experimental import pallas as pl
from jax.experimental.pallas import tpu as pltpu


def _dense_block_kernel(x_ref, g_ref, b_ref, w_ref, o_ref,
                        slab, pbuf, col, *, N, H, W, C, P, eps):
    # x_ref: (C, N*H*W) f32   initial activation, zero-padded to C channels
    # g_ref: (1, C, 1)  f32   BatchNorm gamma for this layer (padded with 1s)
    # b_ref: (1, C, 1)  f32   BatchNorm beta  for this layer (padded with 0s)
    # w_ref: (1, C, 9*C) bf16 im2col conv weight, zero-padded in/out channels
    # o_ref: (C, N*H*W) f32   final concatenated activation
    # slab : (C, N*H*W) f32   persistent VMEM slab holding the growing concat
    # pbuf : (C, 2*P + H*W) f32  flat shift buffer with zero halos of width P
    # col  : (9*C, H*W) bf16  im2col matrix for one image
    l = pl.program_id(0)
    HW = H * W

    @pl.when(l == 0)
    def _init():
        slab[...] = x_ref[...]
        pbuf[...] = jnp.zeros_like(pbuf)   # halo zeroed once; interior is
                                           # fully rewritten before every use

    # BatchNorm2d batch statistics (training-mode, biased variance), per
    # channel over (N, H, W).  Channels not yet produced are all-zero in the
    # slab and carry zero weights downstream, so they are harmless.
    act = slab[...]                                            # (C, N*HW)
    mean = jnp.mean(act, axis=1, keepdims=True)                # (C, 1)
    var = jnp.mean(jnp.square(act - mean), axis=1, keepdims=True)
    scale = g_ref[0] / jnp.sqrt(var + eps)                     # (C, 1)
    shift = b_ref[0] - mean * scale

    w = w_ref[0]                                               # (C, 9*C) bf16

    # Horizontal-border masks for the +/-1 column taps (hoisted out of loops).
    xpos = lax.broadcasted_iota(jnp.int32, (C, HW), 1) % W
    not_left_edge = xpos > 0
    not_right_edge = xpos < W - 1

    for n in range(N):                                         # N is small; static unroll
        sl = slice(n * HW, (n + 1) * HW)
        a = jnp.maximum(act[:, sl] * scale + shift, 0.0)       # folded BN + ReLU
        pbuf[:, P:P + HW] = a                                  # interior (lane-aligned)

        # Build the (9*C, HW) im2col matrix with static lane shifts + masks.
        for tap in range(9):
            ky, kx = tap // 3 - 1, tap % 3 - 1
            s = ky * W + kx
            shifted = pbuf[:, P + s:P + s + HW]                # (C, HW)
            if kx == -1:
                shifted = jnp.where(not_left_edge, shifted, 0.0)
            elif kx == 1:
                shifted = jnp.where(not_right_edge, shifted, 0.0)
            col[tap * C:(tap + 1) * C, :] = shifted.astype(col.dtype)

        # Single MXU matmul, K = 9*C, lanes carry HW (lane-dense output).
        contrib = jnp.dot(w, col[...], preferred_element_type=jnp.float32)
        # Weight zero-padding makes `contrib` nonzero only in this layer's
        # growth_rate output channels -> plain add implements torch.cat.
        slab[:, sl] = act[:, sl] + contrib

    @pl.when(l == pl.num_programs(0) - 1)
    def _finalize():
        o_ref[...] = slab[...]


def dense_block_pallas(x_nchw, params, eps=1e-5):
    """Fused DenseBlock forward. x is NCHW (like PyTorch); returns NCHW."""
    N, C0, H, W = x_nchw.shape
    L = len(params)
    G = params[0][2].shape[0]                   # growth_rate
    C = C0 + L * G                              # final channel count
    HW = H * W
    P = 128                                     # halo width (>= W + 1, lane-aligned)
    assert W + 1 <= P

    # --- per-layer padded parameters (cheap, trace-time glue) ---------------
    g_list, b_list, w_list = [], [], []
    for l, (gamma, beta, w) in enumerate(params):
        cin = C0 + l * G                        # input channels of layer l
        g_list.append(jnp.ones((C,), jnp.float32).at[:cin].set(gamma))
        b_list.append(jnp.zeros((C,), jnp.float32).at[:cin].set(beta))
        # (G, cin, 3, 3) -> im2col columns ordered (tap, ci) with ci padded to C
        wc = jnp.zeros((G, 9, C), jnp.float32)
        wc = wc.at[:, :, :cin].set(jnp.transpose(w, (0, 2, 3, 1)).reshape(G, 9, cin))
        # scatter output rows to this layer's channel slot [cin, cin + G)
        wf = jnp.zeros((C, 9 * C), jnp.float32).at[cin:cin + G, :].set(wc.reshape(G, 9 * C))
        w_list.append(wf)
    g_all = jnp.stack(g_list)[:, :, None]                   # (L, C, 1) f32
    b_all = jnp.stack(b_list)[:, :, None]                   # (L, C, 1) f32
    w_all = jnp.stack(w_list).astype(jnp.bfloat16)          # (L, C, 9*C) bf16

    # NCHW -> channel-major flat (C, N*H*W), zero-padded to C_total channels.
    x_flat = jnp.transpose(x_nchw.astype(jnp.float32), (1, 0, 2, 3)).reshape(C0, N * HW)
    x_pad = jnp.zeros((C, N * HW), jnp.float32).at[:C0].set(x_flat)

    kernel = functools.partial(_dense_block_kernel,
                               N=N, H=H, W=W, C=C, P=P, eps=eps)
    out_flat = pl.pallas_call(
        kernel,
        out_shape=jax.ShapeDtypeStruct((C, N * HW), jnp.float32),
        grid_spec=pltpu.PrefetchScalarGridSpec(
            num_scalar_prefetch=0,
            grid=(L,),
            in_specs=[
                pl.BlockSpec((C, N * HW), lambda l: (0, 0)),
                pl.BlockSpec((1, C, 1), lambda l: (l, 0, 0)),
                pl.BlockSpec((1, C, 1), lambda l: (l, 0, 0)),
                pl.BlockSpec((1, C, 9 * C), lambda l: (l, 0, 0)),
            ],
            out_specs=pl.BlockSpec((C, N * HW), lambda l: (0, 0)),
            scratch_shapes=[
                pltpu.VMEM((C, N * HW), jnp.float32),        # concat slab
                pltpu.VMEM((C, 2 * P + HW), jnp.float32),    # flat shift buffer
                pltpu.VMEM((9 * C, HW), jnp.bfloat16),       # im2col matrix
            ],
        ),
        # Layers depend on each other through the slab -> sequential grid.
        # TODO(synk): on v7x (2 TCs) there is no independent grid axis to mark
        # "parallel" because BN batch statistics couple the whole batch.
        compiler_params=pltpu.CompilerParams(dimension_semantics=("arbitrary",)),
    )(x_pad, g_all, b_all, w_all)

    return jnp.transpose(out_flat.reshape(C, N, H, W), (1, 0, 2, 3))   # -> NCHW


def init_params(key, num_layers, in_channels, growth_rate):
    params = []
    ch = in_channels
    for _ in range(num_layers):
        key, wk = jax.random.split(key)
        gamma = jnp.ones((ch,), jnp.float32)     # BatchNorm2d default weight
        beta = jnp.zeros((ch,), jnp.float32)     # BatchNorm2d default bias
        w = 0.1 * jax.random.normal(wk, (growth_rate, ch, 3, 3), jnp.float32)  # OIHW
        params.append((gamma, beta, w))
        ch += growth_rate
    return params


def dense_block_reference(x_nchw, params, eps=1e-5):
    """Pure-JAX reference (lax.conv) with identical semantics, incl. the bf16
    MXU-input precision used by the kernel (accumulation in f32)."""
    x = x_nchw.astype(jnp.float32)
    for gamma, beta, w in params:
        mean = jnp.mean(x, axis=(0, 2, 3))
        var = jnp.mean(jnp.square(x - mean[None, :, None, None]), axis=(0, 2, 3))
        scale = gamma / jnp.sqrt(var + eps)
        shift = beta - mean * scale
        a = jnp.maximum(x * scale[None, :, None, None] + shift[None, :, None, None], 0.0)
        out = lax.conv_general_dilated(
            a.astype(jnp.bfloat16), w.astype(jnp.bfloat16),
            window_strides=(1, 1), padding="SAME",
            dimension_numbers=("NCHW", "OIHW", "NCHW"),
            preferred_element_type=jnp.float32)
        x = jnp.concatenate([x, out], axis=1)                  # torch.cat(dim=1)
    return x


if __name__ == "__main__":
    num_layers, in_channels, growth_rate = 3, 4, 4
    key = jax.random.PRNGKey(0)
    key, xk = jax.random.split(key)
    x = jax.random.normal(xk, (2, in_channels, 16, 16), jnp.float32)   # NCHW like PyTorch
    params = init_params(key, num_layers, in_channels, growth_rate)

    fwd = jax.jit(dense_block_pallas)
    y = jax.block_until_ready(fwd(x, params))
    y_ref = jax.block_until_ready(dense_block_reference(x, params))

    assert y.shape == (2, in_channels + num_layers * growth_rate, 16, 16), y.shape
    max_err = float(jnp.max(jnp.abs(y - y_ref)))
    assert jnp.allclose(y, y_ref, rtol=2e-2, atol=2e-2), max_err
    print("KERNEL_OK")
</pallas_src>

<mosaic_0001>
module attributes {stable_mosaic.version = 11 : i64} {
  func.func @_dense_block_kernel(%arg0: i32, %arg1: memref<16x512xf32, #tpu.memory_space<vmem>>, %arg2: memref<1x16x1xf32, #tpu.memory_space<vmem>>, %arg3: memref<1x16x1xf32, #tpu.memory_space<vmem>>, %arg4: memref<1x16x144xbf16, #tpu.memory_space<vmem>>, %arg5: memref<16x512xf32, #tpu.memory_space<vmem>>, %arg6: memref<16x512xf32, #tpu.memory_space<vmem>>, %arg7: memref<16x512xf32, #tpu.memory_space<vmem>>, %arg8: memref<144x256xbf16, #tpu.memory_space<vmem>>) attributes {dimension_semantics = [#tpu.dimension_semantics<arbitrary>], iteration_bounds = array<i64: 3>, scalar_prefetch = 0 : i64, scratch_operands = 3 : i64, tpu.core_type = #tpu.core_type<tc>, window_params = [{pipeline_mode = #tpu.pipeline_mode<synchronous>, transform_indices = @transform_0, window_bounds = array<i64: 16, 512>}, {transform_indices = @transform_1, window_bounds = array<i64: 1, 16, 1>}, {transform_indices = @transform_2, window_bounds = array<i64: 1, 16, 1>}, {transform_indices = @transform_3, window_bounds = array<i64: 1, 16, 144>}, {pipeline_mode = #tpu.pipeline_mode<synchronous>, transform_indices = @transform_4, window_bounds = array<i64: 16, 512>}]} {
    %c0_i32 = arith.constant 0 : i32
    %0 = arith.cmpi eq, %arg0, %c0_i32 : i32
    %1 = arith.extui %0 : i1 to i32
    %c0_i32_0 = arith.constant 0 : i32
    %2 = arith.cmpi ne, %1, %c0_i32_0 : i32
    scf.if %2 {
      %c0_105 = arith.constant 0 : index
      %c0_106 = arith.constant 0 : index
      %155 = vector.load %arg1[%c0_105, %c0_106] : memref<16x512xf32, #tpu.memory_space<vmem>>, vector<16x512xf32>
      %c0_107 = arith.constant 0 : index
      %c0_108 = arith.constant 0 : index
      %156 = vector.load %arg6[%c0_107, %c0_108] : memref<16x512xf32, #tpu.memory_space<vmem>>, vector<16x512xf32>
      tpu.vector_store %arg6[%c0_107, %c0_108], %155 {strides = array<i32>} : memref<16x512xf32, #tpu.memory_space<vmem>>, vector<16x512xf32>,
      %cst_109 = arith.constant 0.000000e+00 : f32
      %157 = vector.broadcast %cst_109 : f32 to vector<16x512xf32>
      %c0_110 = arith.constant 0 : index
      %c0_111 = arith.constant 0 : index
      %158 = vector.load %arg7[%c0_110, %c0_111] : memref<16x512xf32, #tpu.memory_space<vmem>>, vector<16x512xf32>
      tpu.vector_store %arg7[%c0_110, %c0_111], %157 {strides = array<i32>} : memref<16x512xf32, #tpu.memory_space<vmem>>, vector<16x512xf32>,
    } else {
    }
    %c0 = arith.constant 0 : index
    %c0_1 = arith.constant 0 : index
    %3 = vector.load %arg6[%c0, %c0_1] : memref<16x512xf32, #tpu.memory_space<vmem>>, vector<16x512xf32>
    %cst = arith.constant dense<0.000000e+00> : vector<16xf32>
    %4 = vector.multi_reduction <add>, %3, %cst [1] : vector<16x512xf32> to vector<16xf32>
    %5 = vector.shape_cast %4 : vector<16xf32> to vector<16x1xf32>
    %cst_2 = arith.constant 5.120000e+02 : f32
    %6 = vector.broadcast %cst_2 : f32 to vector<16x1xf32>
    %7 = arith.divf %5, %6 : vector<16x1xf32>
    %8 = vector.broadcast %7 : vector<16x1xf32> to vector<16x512xf32>
    %9 = arith.subf %3, %8 : vector<16x512xf32>
    %10 = arith.mulf %9, %9 : vector<16x512xf32>
    %cst_3 = arith.constant dense<0.000000e+00> : vector<16xf32>
    %11 = vector.multi_reduction <add>, %10, %cst_3 [1] : vector<16x512xf32> to vector<16xf32>
    %12 = vector.shape_cast %11 : vector<16xf32> to vector<16x1xf32>
    %cst_4 = arith.constant 5.120000e+02 : f32
    %13 = vector.broadcast %cst_4 : f32 to vector<16x1xf32>
    %14 = arith.divf %12, %13 : vector<16x1xf32>
    %c0_5 = arith.constant 0 : index
    %c0_6 = arith.constant 0 : index
    %c0_7 = arith.constant 0 : index
    %15 = vector.load %arg2[%c0_5, %c0_6, %c0_7] : memref<1x16x1xf32, #tpu.memory_space<vmem>>, vector<1x16x1xf32>
    %16 = vector.shape_cast %15 : vector<1x16x1xf32> to vector<16x1xf32>
    %cst_8 = arith.constant 9.99999974E-6 : f32
    %17 = vector.broadcast %cst_8 : f32 to vector<16x1xf32>
    %18 = arith.addf %14, %17 : vector<16x1xf32>
    %19 = math.sqrt %18 : vector<16x1xf32>
    %20 = arith.divf %16, %19 : vector<16x1xf32>
    %c0_9 = arith.constant 0 : index
    %c0_10 = arith.constant 0 : index
    %c0_11 = arith.constant 0 : index
    %21 = vector.load %arg3[%c0_9, %c0_10, %c0_11] : memref<1x16x1xf32, #tpu.memory_space<vmem>>, vector<1x16x1xf32>
    %22 = vector.shape_cast %21 : vector<1x16x1xf32> to vector<16x1xf32>
    %23 = arith.mulf %7, %20 : vector<16x1xf32>
    %24 = arith.subf %22, %23 : vector<16x1xf32>
    %c0_12 = arith.constant 0 : index
    %c0_13 = arith.constant 0 : index
    %c0_14 = arith.constant 0 : index
    %25 = vector.load %arg4[%c0_12, %c0_13, %c0_14] : memref<1x16x144xbf16, #tpu.memory_space<vmem>>, vector<1x16x144xbf16>
    %26 = vector.shape_cast %25 : vector<1x16x144xbf16> to vector<16x144xbf16>
    %27 = tpu.iota {dimensions = array<i32: 1>} : vector<16x256xi32>
    %c16_i32 = arith.constant 16 : i32
    %c0_i32_15 = arith.constant 0 : i32
    %28 = arith.cmpi eq, %c16_i32, %c0_i32_15 : i32
    %c1_i32 = arith.constant 1 : i32
    %29 = arith.select %28, %c1_i32, %c16_i32 : i32
    %30 = vector.broadcast %29 : i32 to vector<16x256xi32>
    %31 = arith.remsi %27, %30 : vector<16x256xi32>
    %c0_i32_16 = arith.constant 0 : i32
    %32 = vector.broadcast %c0_i32_16 : i32 to vector<16x256xi32>
    %33 = arith.cmpi ne, %31, %32 : vector<16x256xi32>
    %c0_i32_17 = arith.constant 0 : i32
    %34 = vector.broadcast %c0_i32_17 : i32 to vector<16x256xi32>
    %35 = arith.cmpi slt, %31, %34 : vector<16x256xi32>
    %c0_i32_18 = arith.constant 0 : i32
    %36 = arith.cmpi slt, %29, %c0_i32_18 : i32
    %37 = vector.broadcast %36 : i1 to vector<16x256xi1>
    %38 = vector.broadcast %37 : vector<16x256xi1> to vector<16x256xi1>
    %39 = arith.xori %35, %38 : vector<16x256xi1>
    %40 = arith.andi %39, %33 : vector<16x256xi1>
    %41 = vector.broadcast %29 : i32 to vector<16x256xi32>
    %42 = arith.addi %31, %41 : vector<16x256xi32>
    %43 = arith.select %40, %42, %31 : vector<16x256xi1>, vector<16x256xi32>
    %c0_i32_19 = arith.constant 0 : i32
    %44 = vector.broadcast %c0_i32_19 : i32 to vector<16x256xi32>
    %45 = arith.cmpi sgt, %43, %44 : vector<16x256xi32>
    %c15_i32 = arith.constant 15 : i32
    %46 = vector.broadcast %c15_i32 : i32 to vector<16x256xi32>
    %47 = arith.cmpi slt, %43, %46 : vector<16x256xi32>
    %48 = vector.extract_strided_slice %3 {offsets = [0, 0], sizes = [16, 256], strides = [1, 1]} : vector<16x512xf32> to vector<16x256xf32>
    %49 = vector.broadcast %20 : vector<16x1xf32> to vector<16x256xf32>
    %50 = arith.mulf %48, %49 : vector<16x256xf32>
    %51 = vector.broadcast %24 : vector<16x1xf32> to vector<16x256xf32>
    %52 = arith.addf %50, %51 : vector<16x256xf32>
    %cst_20 = arith.constant 0.000000e+00 : f32
    %53 = vector.broadcast %cst_20 : f32 to vector<16x256xf32>
    %54 = arith.maximumf %52, %53 : vector<16x256xf32>
    %c0_21 = arith.constant 0 : index
    %c128 = arith.constant 128 : index
    %55 = vector.load %arg7[%c0_21, %c128] : memref<16x512xf32, #tpu.memory_space<vmem>>, vector<16x256xf32>
    tpu.vector_store %arg7[%c0_21, %c128], %54 {strides = array<i32>} : memref<16x512xf32, #tpu.memory_space<vmem>>, vector<16x256xf32>,
    %c0_22 = arith.constant 0 : index
    %c111 = arith.constant 111 : index
    %56 = vector.load %arg7[%c0_22, %c111] : memref<16x512xf32, #tpu.memory_space<vmem>>, vector<16x256xf32>
    %cst_23 = arith.constant 0.000000e+00 : f32
    %57 = vector.broadcast %cst_23 : f32 to vector<16x256xf32>
    %58 = arith.select %45, %56, %57 : vector<16x256xi1>, vector<16x256xf32>
    %59 = arith.truncf %58 : vector<16x256xf32> to vector<16x256xbf16>
    %c0_24 = arith.constant 0 : index
    %c0_25 = arith.constant 0 : index
    %60 = vector.load %arg8[%c0_24, %c0_25] : memref<144x256xbf16, #tpu.memory_space<vmem>>, vector<16x256xbf16>
    tpu.vector_store %arg8[%c0_24, %c0_25], %59 {strides = array<i32>} : memref<144x256xbf16, #tpu.memory_space<vmem>>, vector<16x256xbf16>,
    %c0_26 = arith.constant 0 : index
    %c112 = arith.constant 112 : index
    %61 = vector.load %arg7[%c0_26, %c112] : memref<16x512xf32, #tpu.memory_space<vmem>>, vector<16x256xf32>
    %62 = arith.truncf %61 : vector<16x256xf32> to vector<16x256xbf16>
    %c16 = arith.constant 16 : index
    %c0_27 = arith.constant 0 : index
    %63 = vector.load %arg8[%c16, %c0_27] : memref<144x256xbf16, #tpu.memory_space<vmem>>, vector<16x256xbf16>
    tpu.vector_store %arg8[%c16, %c0_27], %62 {strides = array<i32>} : memref<144x256xbf16, #tpu.memory_space<vmem>>, vector<16x256xbf16>,
    %c0_28 = arith.constant 0 : index
    %c113 = arith.constant 113 : index
    %64 = vector.load %arg7[%c0_28, %c113] : memref<16x512xf32, #tpu.memory_space<vmem>>, vector<16x256xf32>
    %cst_29 = arith.constant 0.000000e+00 : f32
    %65 = vector.broadcast %cst_29 : f32 to vector<16x256xf32>
    %66 = arith.select %47, %64, %65 : vector<16x256xi1>, vector<16x256xf32>
    %67 = arith.truncf %66 : vector<16x256xf32> to vector<16x256xbf16>
    %c32 = arith.constant 32 : index
    %c0_30 = arith.constant 0 : index
    %68 = vector.load %arg8[%c32, %c0_30] : memref<144x256xbf16, #tpu.memory_space<vmem>>, vector<16x256xbf16>
    tpu.vector_store %arg8[%c32, %c0_30], %67 {strides = array<i32>} : memref<144x256xbf16, #tpu.memory_space<vmem>>, vector<16x256xbf16>,
    %c0_31 = arith.constant 0 : index
    %c127 = arith.constant 127 : index
    %69 = vector.load %arg7[%c0_31, %c127] : memref<16x512xf32, #tpu.memory_space<vmem>>, vector<16x256xf32>
    %cst_32 = arith.constant 0.000000e+00 : f32
    %70 = vector.broadcast %cst_32 : f32 to vector<16x256xf32>
    %71 = arith.select %45, %69, %70 : vector<16x256xi1>, vector<16x256xf32>
    %72 = arith.truncf %71 : vector<16x256xf32> to vector<16x256xbf16>
    %c48 = arith.constant 48 : index
    %c0_33 = arith.constant 0 : index
    %73 = vector.load %arg8[%c48, %c0_33] : memref<144x256xbf16, #tpu.memory_space<vmem>>, vector<16x256xbf16>
    tpu.vector_store %arg8[%c48, %c0_33], %72 {strides = array<i32>} : memref<144x256xbf16, #tpu.memory_space<vmem>>, vector<16x256xbf16>,
    %c0_34 = arith.constant 0 : index
    %c128_35 = arith.constant 128 : index
    %74 = vector.load %arg7[%c0_34, %c128_35] : memref<16x512xf32, #tpu.memory_space<vmem>>, vector<16x256xf32>
    %75 = arith.truncf %74 : vector<16x256xf32> to vector<16x256xbf16>
    %c64 = arith.constant 64 : index
    %c0_36 = arith.constant 0 : index
    %76 = vector.load %arg8[%c64, %c0_36] : memref<144x256xbf16, #tpu.memory_space<vmem>>, vector<16x256xbf16>
    tpu.vector_store %arg8[%c64, %c0_36], %75 {strides = array<i32>} : memref<144x256xbf16, #tpu.memory_space<vmem>>, vector<16x256xbf16>,
    %c0_37 = arith.constant 0 : index
    %c129 = arith.constant 129 : index
    %77 = vector.load %arg7[%c0_37, %c129] : memref<16x512xf32, #tpu.memory_space<vmem>>, vector<16x256xf32>
    %cst_38 = arith.constant 0.000000e+00 : f32
    %78 = vector.broadcast %cst_38 : f32 to vector<16x256xf32>
    %79 = arith.select %47, %77, %78 : vector<16x256xi1>, vector<16x256xf32>
    %80 = arith.truncf %79 : vector<16x256xf32> to vector<16x256xbf16>
    %c80 = arith.constant 80 : index
    %c0_39 = arith.constant 0 : index
    %81 = vector.load %arg8[%c80, %c0_39] : memref<144x256xbf16, #tpu.memory_space<vmem>>, vector<16x256xbf16>
    tpu.vector_store %arg8[%c80, %c0_39], %80 {strides = array<i32>} : memref<144x256xbf16, #tpu.memory_space<vmem>>, vector<16x256xbf16>,
    %c0_40 = arith.constant 0 : index
    %c143 = arith.constant 143 : index
    %82 = vector.load %arg7[%c0_40, %c143] : memref<16x512xf32, #tpu.memory_space<vmem>>, vector<16x256xf32>
    %cst_41 = arith.constant 0.000000e+00 : f32
    %83 = vector.broadcast %cst_41 : f32 to vector<16x256xf32>
    %84 = arith.select %45, %82, %83 : vector<16x256xi1>, vector<16x256xf32>
    %85 = arith.truncf %84 : vector<16x256xf32> to vector<16x256xbf16>
    %c96 = arith.constant 96 : index
    %c0_42 = arith.constant 0 : index
    %86 = vector.load %arg8[%c96, %c0_42] : memref<144x256xbf16, #tpu.memory_space<vmem>>, vector<16x256xbf16>
    tpu.vector_store %arg8[%c96, %c0_42], %85 {strides = array<i32>} : memref<144x256xbf16, #tpu.memory_space<vmem>>, vector<16x256xbf16>,
    %c0_43 = arith.constant 0 : index
    %c144 = arith.constant 144 : index
    %87 = vector.load %arg7[%c0_43, %c144] : memref<16x512xf32, #tpu.memory_space<vmem>>, vector<16x256xf32>
    %88 = arith.truncf %87 : vector<16x256xf32> to vector<16x256xbf16>
    %c112_44 = arith.constant 112 : index
    %c0_45 = arith.constant 0 : index
    %89 = vector.load %arg8[%c112_44, %c0_45] : memref<144x256xbf16, #tpu.memory_space<vmem>>, vector<16x256xbf16>
    tpu.vector_store %arg8[%c112_44, %c0_45], %88 {strides = array<i32>} : memref<144x256xbf16, #tpu.memory_space<vmem>>, vector<16x256xbf16>,
    %c0_46 = arith.constant 0 : index
    %c145 = arith.constant 145 : index
    %90 = vector.load %arg7[%c0_46, %c145] : memref<16x512xf32, #tpu.memory_space<vmem>>, vector<16x256xf32>
    %cst_47 = arith.constant 0.000000e+00 : f32
    %91 = vector.broadcast %cst_47 : f32 to vector<16x256xf32>
    %92 = arith.select %47, %90, %91 : vector<16x256xi1>, vector<16x256xf32>
    %93 = arith.truncf %92 : vector<16x256xf32> to vector<16x256xbf16>
    %c128_48 = arith.constant 128 : index
    %c0_49 = arith.constant 0 : index
    %94 = vector.load %arg8[%c128_48, %c0_49] : memref<144x256xbf16, #tpu.memory_space<vmem>>, vector<16x256xbf16>
    tpu.vector_store %arg8[%c128_48, %c0_49], %93 {strides = array<i32>} : memref<144x256xbf16, #tpu.memory_space<vmem>>, vector<16x256xbf16>,
    %c0_50 = arith.constant 0 : index
    %c0_51 = arith.constant 0 : index
    %95 = vector.load %arg8[%c0_50, %c0_51] : memref<144x256xbf16, #tpu.memory_space<vmem>>, vector<144x256xbf16>
    %cst_52 = arith.constant dense<0.000000e+00> : vector<16x256xf32>
    %96 = tpu.matmul %26, %95, %cst_52 {dimension_numbers = #tpu.dot_dimension_numbers<[1], [0], [0], [1], [0, 0, 1, 1], [], []>} : vector<16x144xbf16>, vector<144x256xbf16>, vector<16x256xf32> -> vector<16x256xf32>
    %97 = vector.extract_strided_slice %3 {offsets = [0, 0], sizes = [16, 256], strides = [1, 1]} : vector<16x512xf32> to vector<16x256xf32>
    %98 = arith.addf %97, %96 : vector<16x256xf32>
    %c0_53 = arith.constant 0 : index
    %c0_54 = arith.constant 0 : index
    %99 = vector.load %arg6[%c0_53, %c0_54] : memref<16x512xf32, #tpu.memory_space<vmem>>, vector<16x256xf32>
    tpu.vector_store %arg6[%c0_53, %c0_54], %98 {strides = array<i32>} : memref<16x512xf32, #tpu.memory_space<vmem>>, vector<16x256xf32>,
    %100 = vector.extract_strided_slice %3 {offsets = [0, 256], sizes = [16, 256], strides = [1, 1]} : vector<16x512xf32> to vector<16x256xf32>
    %101 = vector.broadcast %20 : vector<16x1xf32> to vector<16x256xf32>
    %102 = arith.mulf %100, %101 : vector<16x256xf32>
    %103 = vector.broadcast %24 : vector<16x1xf32> to vector<16x256xf32>
    %104 = arith.addf %102, %103 : vector<16x256xf32>
    %cst_55 = arith.constant 0.000000e+00 : f32
    %105 = vector.broadcast %cst_55 : f32 to vector<16x256xf32>
    %106 = arith.maximumf %104, %105 : vector<16x256xf32>
    %c0_56 = arith.constant 0 : index
    %c128_57 = arith.constant 128 : index
    %107 = vector.load %arg7[%c0_56, %c128_57] : memref<16x512xf32, #tpu.memory_space<vmem>>, vector<16x256xf32>
    tpu.vector_store %arg7[%c0_56, %c128_57], %106 {strides = array<i32>} : memref<16x512xf32, #tpu.memory_space<vmem>>, vector<16x256xf32>,
    %c0_58 = arith.constant 0 : index
    %c111_59 = arith.constant 111 : index
    %108 = vector.load %arg7[%c0_58, %c111_59] : memref<16x512xf32, #tpu.memory_space<vmem>>, vector<16x256xf32>
    %cst_60 = arith.constant 0.000000e+00 : f32
    %109 = vector.broadcast %cst_60 : f32 to vector<16x256xf32>
    %110 = arith.select %45, %108, %109 : vector<16x256xi1>, vector<16x256xf32>
    %111 = arith.truncf %110 : vector<16x256xf32> to vector<16x256xbf16>
    %c0_61 = arith.constant 0 : index
    %c0_62 = arith.constant 0 : index
    %112 = vector.load %arg8[%c0_61, %c0_62] : memref<144x256xbf16, #tpu.memory_space<vmem>>, vector<16x256xbf16>
    tpu.vector_store %arg8[%c0_61, %c0_62], %111 {strides = array<i32>} : memref<144x256xbf16, #tpu.memory_space<vmem>>, vector<16x256xbf16>,
    %c0_63 = arith.constant 0 : index
    %c112_64 = arith.constant 112 : index
    %113 = vector.load %arg7[%c0_63, %c112_64] : memref<16x512xf32, #tpu.memory_space<vmem>>, vector<16x256xf32>
    %114 = arith.truncf %113 : vector<16x256xf32> to vector<16x256xbf16>
    %c16_65 = arith.constant 16 : index
    %c0_66 = arith.constant 0 : index
    %115 = vector.load %arg8[%c16_65, %c0_66] : memref<144x256xbf16, #tpu.memory_space<vmem>>, vector<16x256xbf16>
    tpu.vector_store %arg8[%c16_65, %c0_66], %114 {strides = array<i32>} : memref<144x256xbf16, #tpu.memory_space<vmem>>, vector<16x256xbf16>,
    %c0_67 = arith.constant 0 : index
    %c113_68 = arith.constant 113 : index
    %116 = vector.load %arg7[%c0_67, %c113_68] : memref<16x512xf32, #tpu.memory_space<vmem>>, vector<16x256xf32>
    %cst_69 = arith.constant 0.000000e+00 : f32
    %117 = vector.broadcast %cst_69 : f32 to vector<16x256xf32>
    %118 = arith.select %47, %116, %117 : vector<16x256xi1>, vector<16x256xf32>
    %119 = arith.truncf %118 : vector<16x256xf32> to vector<16x256xbf16>
    %c32_70 = arith.constant 32 : index
    %c0_71 = arith.constant 0 : index
    %120 = vector.load %arg8[%c32_70, %c0_71] : memref<144x256xbf16, #tpu.memory_space<vmem>>, vector<16x256xbf16>
    tpu.vector_store %arg8[%c32_70, %c0_71], %119 {strides = array<i32>} : memref<144x256xbf16, #tpu.memory_space<vmem>>, vector<16x256xbf16>,
    %c0_72 = arith.constant 0 : index
    %c127_73 = arith.constant 127 : index
    %121 = vector.load %arg7[%c0_72, %c127_73] : memref<16x512xf32, #tpu.memory_space<vmem>>, vector<16x256xf32>
    %cst_74 = arith.constant 0.000000e+00 : f32
    %122 = vector.broadcast %cst_74 : f32 to vector<16x256xf32>
    %123 = arith.select %45, %121, %122 : vector<16x256xi1>, vector<16x256xf32>
    %124 = arith.truncf %123 : vector<16x256xf32> to vector<16x256xbf16>
    %c48_75 = arith.constant 48 : index
    %c0_76 = arith.constant 0 : index
    %125 = vector.load %arg8[%c48_75, %c0_76] : memref<144x256xbf16, #tpu.memory_space<vmem>>, vector<16x256xbf16>
    tpu.vector_store %arg8[%c48_75, %c0_76], %124 {strides = array<i32>} : memref<144x256xbf16, #tpu.memory_space<vmem>>, vector<16x256xbf16>,
    %c0_77 = arith.constant 0 : index
    %c128_78 = arith.constant 128 : index
    %126 = vector.load %arg7[%c0_77, %c128_78] : memref<16x512xf32, #tpu.memory_space<vmem>>, vector<16x256xf32>
    %127 = arith.truncf %126 : vector<16x256xf32> to vector<16x256xbf16>
    %c64_79 = arith.constant 64 : index
    %c0_80 = arith.constant 0 : index
    %128 = vector.load %arg8[%c64_79, %c0_80] : memref<144x256xbf16, #tpu.memory_space<vmem>>, vector<16x256xbf16>
    tpu.vector_store %arg8[%c64_79, %c0_80], %127 {strides = array<i32>} : memref<144x256xbf16, #tpu.memory_space<vmem>>, vector<16x256xbf16>,
    %c0_81 = arith.constant 0 : index
    %c129_82 = arith.constant 129 : index
    %129 = vector.load %arg7[%c0_81, %c129_82] : memref<16x512xf32, #tpu.memory_space<vmem>>, vector<16x256xf32>
    %cst_83 = arith.constant 0.000000e+00 : f32
    %130 = vector.broadcast %cst_83 : f32 to vector<16x256xf32>
    %131 = arith.select %47, %129, %130 : vector<16x256xi1>, vector<16x256xf32>
    %132 = arith.truncf %131 : vector<16x256xf32> to vector<16x256xbf16>
    %c80_84 = arith.constant 80 : index
    %c0_85 = arith.constant 0 : index
    %133 = vector.load %arg8[%c80_84, %c0_85] : memref<144x256xbf16, #tpu.memory_space<vmem>>, vector<16x256xbf16>
    tpu.vector_store %arg8[%c80_84, %c0_85], %132 {strides = array<i32>} : memref<144x256xbf16, #tpu.memory_space<vmem>>, vector<16x256xbf16>,
    %c0_86 = arith.constant 0 : index
    %c143_87 = arith.constant 143 : index
    %134 = vector.load %arg7[%c0_86, %c143_87] : memref<16x512xf32, #tpu.memory_space<vmem>>, vector<16x256xf32>
    %cst_88 = arith.constant 0.000000e+00 : f32
    %135 = vector.broadcast %cst_88 : f32 to vector<16x256xf32>
    %136 = arith.select %45, %134, %135 : vector<16x256xi1>, vector<16x256xf32>
    %137 = arith.truncf %136 : vector<16x256xf32> to vector<16x256xbf16>
    %c96_89 = arith.constant 96 : index
    %c0_90 = arith.constant 0 : index
    %138 = vector.load %arg8[%c96_89, %c0_90] : memref<144x256xbf16, #tpu.memory_space<vmem>>, vector<16x256xbf16>
    tpu.vector_store %arg8[%c96_89, %c0_90], %137 {strides = array<i32>} : memref<144x256xbf16, #tpu.memory_space<vmem>>, vector<16x256xbf16>,
    %c0_91 = arith.constant 0 : index
    %c144_92 = arith.constant 144 : index
    %139 = vector.load %arg7[%c0_91, %c144_92] : memref<16x512xf32, #tpu.memory_space<vmem>>, vector<16x256xf32>
    %140 = arith.truncf %139 : vector<16x256xf32> to vector<16x256xbf16>
    %c112_93 = arith.constant 112 : index
    %c0_94 = arith.constant 0 : index
    %141 = vector.load %arg8[%c112_93, %c0_94] : memref<144x256xbf16, #tpu.memory_space<vmem>>, vector<16x256xbf16>
    tpu.vector_store %arg8[%c112_93, %c0_94], %140 {strides = array<i32>} : memref<144x256xbf16, #tpu.memory_space<vmem>>, vector<16x256xbf16>,
    %c0_95 = arith.constant 0 : index
    %c145_96 = arith.constant 145 : index
    %142 = vector.load %arg7[%c0_95, %c145_96] : memref<16x512xf32, #tpu.memory_space<vmem>>, vector<16x256xf32>
    %cst_97 = arith.constant 0.000000e+00 : f32
    %143 = vector.broadcast %cst_97 : f32 to vector<16x256xf32>
    %144 = arith.select %47, %142, %143 : vector<16x256xi1>, vector<16x256xf32>
    %145 = arith.truncf %144 : vector<16x256xf32> to vector<16x256xbf16>
    %c128_98 = arith.constant 128 : index
    %c0_99 = arith.constant 0 : index
    %146 = vector.load %arg8[%c128_98, %c0_99] : memref<144x256xbf16, #tpu.memory_space<vmem>>, vector<16x256xbf16>
    tpu.vector_store %arg8[%c128_98, %c0_99], %145 {strides = array<i32>} : memref<144x256xbf16, #tpu.memory_space<vmem>>, vector<16x256xbf16>,
    %c0_100 = arith.constant 0 : index
    %c0_101 = arith.constant 0 : index
    %147 = vector.load %arg8[%c0_100, %c0_101] : memref<144x256xbf16, #tpu.memory_space<vmem>>, vector<144x256xbf16>
    %cst_102 = arith.constant dense<0.000000e+00> : vector<16x256xf32>
    %148 = tpu.matmul %26, %147, %cst_102 {dimension_numbers = #tpu.dot_dimension_numbers<[1], [0], [0], [1], [0, 0, 1, 1], [], []>} : vector<16x144xbf16>, vector<144x256xbf16>, vector<16x256xf32> -> vector<16x256xf32>
    %149 = vector.extract_strided_slice %3 {offsets = [0, 256], sizes = [16, 256], strides = [1, 1]} : vector<16x512xf32> to vector<16x256xf32>
    %150 = arith.addf %149, %148 : vector<16x256xf32>
    %c0_103 = arith.constant 0 : index
    %c256 = arith.constant 256 : index
    %151 = vector.load %arg6[%c0_103, %c256] : memref<16x512xf32, #tpu.memory_space<vmem>>, vector<16x256xf32>
    tpu.vector_store %arg6[%c0_103, %c256], %150 {strides = array<i32>} : memref<16x512xf32, #tpu.memory_space<vmem>>, vector<16x256xf32>,
    %c2_i32 = arith.constant 2 : i32
    %152 = arith.cmpi eq, %arg0, %c2_i32 : i32
    %153 = arith.extui %152 : i1 to i32
    %c0_i32_104 = arith.constant 0 : i32
    %154 = arith.cmpi ne, %153, %c0_i32_104 : i32
    scf.if %154 {
      %c0_105 = arith.constant 0 : index
      %c0_106 = arith.constant 0 : index
      %155 = vector.load %arg6[%c0_105, %c0_106] : memref<16x512xf32, #tpu.memory_space<vmem>>, vector<16x512xf32>
      %c0_107 = arith.constant 0 : index
      %c0_108 = arith.constant 0 : index
      %156 = vector.load %arg5[%c0_107, %c0_108] : memref<16x512xf32, #tpu.memory_space<vmem>>, vector<16x512xf32>
      tpu.vector_store %arg5[%c0_107, %c0_108], %155 {strides = array<i32>} : memref<16x512xf32, #tpu.memory_space<vmem>>, vector<16x512xf32>,
    } else {
    }
    return
  }
  func.func @transform_0(%arg0: i32) -> (i32, i32) {
    %c0_i32 = arith.constant 0 : i32
    %c0_i32_0 = arith.constant 0 : i32
    %c0_i32_1 = arith.constant 0 : i32
    return %c0_i32, %c0_i32_0 : i32, i32
  }
  func.func @transform_1(%arg0: i32) -> (i32, i32, i32) {
    %c0_i32 = arith.constant 0 : i32
    %c0_i32_0 = arith.constant 0 : i32
    %c0_i32_1 = arith.constant 0 : i32
    return %arg0, %c0_i32, %c0_i32_0 : i32, i32, i32
  }
  func.func @transform_2(%arg0: i32) -> (i32, i32, i32) {
    %c0_i32 = arith.constant 0 : i32
    %c0_i32_0 = arith.constant 0 : i32
    %c0_i32_1 = arith.constant 0 : i32
    return %arg0, %c0_i32, %c0_i32_0 : i32, i32, i32
  }
  func.func @transform_3(%arg0: i32) -> (i32, i32, i32) {
    %c0_i32 = arith.constant 0 : i32
    %c0_i32_0 = arith.constant 0 : i32
    %c0_i32_1 = arith.constant 0 : i32
    return %arg0, %c0_i32, %c0_i32_0 : i32, i32, i32
  }
  func.func @transform_4(%arg0: i32) -> (i32, i32) {
    %c0_i32 = arith.constant 0 : i32
    %c0_i32_0 = arith.constant 0 : i32
    %c0_i32_1 = arith.constant 0 : i32
    return %c0_i32, %c0_i32_0 : i32, i32
  }
}

</mosaic_0001>

<bundles_post_ra>
// kernel: dense_block_pallas.1
= control target key start
LH: loop header
LB: loop body
LE: loop exit
PB: predicated region body
PF: predicated region fallthrough
CT: control target
= control target key end

     0   :  { %s1584_s15 = smov 0   ;;  %s2011_s0 = inlined_call_operand.vmem [shape: f32[16,512], index: 0, kind: input, shape index: {}]   ;;  %s2012_s1 = inlined_call_operand.vmem [shape: f32[3,16,1], index: 1, kind: input, shape index: {}]   ;;  %s2013_s2 = inlined_call_operand.vmem [shape: f32[3,16,1], index: 2, kind: input, shape index: {}]   ;;  %s2014_s3 = inlined_call_operand.vmem [shape: bf16[3,16,144], index: 3, kind: input, shape index: {}]   ;;  %s2015_s4 = inlined_call_operand.vmem [shape: f32[16,512], index: 4, kind: output, shape index: {}]  }
   0x1 LB: > { %s1590_s16 = sadd.s32 4294967295, %s1547_s15   ;;  %p1240_p0 = scmp.ge.s32.totalorder %s1547_s15, 1  ;;  %s1547_s15 = sphi %s1584_s15, %s14_s15  }
   0x2   : > { %p177_p1 = scmp.lt.s32.totalorder %s1547_s15, 4 }
   0x4   : > { %p178_p2 = pnand %p1240_p0, %p177_p1 }
   0x5   : > { %p208_p3 = scmp.lt.s32.totalorder (!%p178_p2), %s1590_s16, 2  ;;  %p1247_p4 = scmp.ne.s32.totalorder (!%p178_p2), %s1590_s16, 0 }
   0x6   : > { %181 = sbr.rel (%p178_p2) target bundleno = 933 (0x3a5), region = 36 }
   0xd   : > { %s209_s17 = scalar_select %p208_p3, %s1590_s16, 2 }
   0xe   : > { %227 = sbr.rel (%p1247_p4) target bundleno = 21 (0x15), region = 40  ;;  %v228_v0 = vld [vmem:[%s2011_s0] sm:$0xff] (!%p1247_p4)  ;;  %v229_v1 = vld [vmem:[%s2011_s0 + $0x8] sm:$0xff] (!%p1247_p4)  ;;  %v230_v2 = vld [vmem:[%s2011_s0 + $0x10] sm:$0xff] (!%p1247_p4)  ;;  %v1549_v6 = vmov (!%p1247_p4), 0.0  }
   0xf   : > { %s1255_s18 = sshll.u32 %s209_s17, 4  ;;  %236 = vst [vmem:[#allocation2] sm:$0xff] (!%p1247_p4), %v228_v0  ;;  %237 = vst [vmem:[#allocation2 + $0x8] sm:$0xff] (!%p1247_p4), %v229_v1  ;;  %v231_v3 = vld [vmem:[%s2011_s0 + $0x18] sm:$0xff] (!%p1247_p4)  ;;  %v232_v4 = vld [vmem:[%s2011_s0 + $0x20] sm:$0xff] (!%p1247_p4) }
  0x10   : > { %s1599_s21 = scalar_lea.vmem %s2012_s1, %s1255_s18  ;;  %s1604_s24 = scalar_lea.vmem %s2013_s2, %s1255_s18  ;;  %238 = vst [vmem:[#allocation2 + $0x10] sm:$0xff] (!%p1247_p4), %v230_v2  ;;  %v233_v5 = vld [vmem:[%s2011_s0 + $0x28] sm:$0xff] (!%p1247_p4)  ;;  %244 = vst [vmem:[#allocation3] sm:$0xff] (!%p1247_p4), %v1549_v6  ;;  %v234_v7 = vld [vmem:[%s2011_s0 + $0x30] sm:$0xff] (!%p1247_p4) }
  0x11   : > { %s1609_s27 = scalar_lea.vmem %s2014_s3, %s1255_s18  ;;  %247 = vst [vmem:[#allocation3 + $0x18] sm:$0xff] (!%p1247_p4), %v1549_v6  ;;  %248 = vst [vmem:[#allocation3 + $0x20] sm:$0xff] (!%p1247_p4), %v1549_v6  ;;  %v235_v8 = vld [vmem:[%s2011_s0 + $0x38] sm:$0xff] (!%p1247_p4) }
  0x12   : > { %251 = vst [vmem:[#allocation3 + $0x38] sm:$0xff] (!%p1247_p4), %v1549_v6  ;;  %239 = vst [vmem:[#allocation2 + $0x18] sm:$0xff] (!%p1247_p4), %v231_v3 }
  0x13   : > { %240 = vst [vmem:[#allocation2 + $0x20] sm:$0xff] (!%p1247_p4), %v232_v4  ;;  %241 = vst [vmem:[#allocation2 + $0x28] sm:$0xff] (!%p1247_p4), %v233_v5 }
  0x14   : > { %242 = vst [vmem:[#allocation2 + $0x30] sm:$0xff] (!%p1247_p4), %v234_v7  ;;  %243 = vst [vmem:[#allocation2 + $0x38] sm:$0xff] (!%p1247_p4), %v235_v8 }
  0x15 PF: > { %v1550_v49 = vmov 0   ;;  %v301_v2 = vld [vmem:[%s1599_s21] sm:$0xff]  ;;  %v302_v5 = vld [vmem:[%s1599_s21 + $0x8] sm:$0xff]  ;;  %s1551_s20 = smov 17   ;;  %s1552_s21 = smov 16   ;;  %vm457_vm4 = vcmask 130048  }
  0x16   : > { %v1636_v9 = vld [vmem:[#allocation2] sm:$0xff]  ;;  %v1638_v10 = vld [vmem:[#allocation2 + $0x8] sm:$0xff]  ;;  %1348 = vset.pattern.permute.xlu0 %v1550_v49  ;;  %1349 = vset.pattern.permute.xlu1 %v1550_v49  ;;  %s1553_s22 = smov 15   ;;  %s1554_s23 = smov 1   ;;  %vm422_vm6 = vcmask 138240   ;;  %vm488_vm10 = vcmask 121856  }
  0x17   : > { %v1640_v11 = vld [vmem:[#allocation2 + $0x10] sm:$0xff]  ;;  %v260_v12 = vadd.f32 %v1638_v10, %v1636_v9  ;;  %v398_v6 = vld [vmem:[#allocation3] sm:$0xff]  ;;  %s1556_s25 = smov 113   ;;  %s1557_s26 = smov 112   ;;  %vm529_vm14 = vcmask 7168  }
  0x18   : > { %v401_v7 = vld [vmem:[#allocation3 + $0x20] sm:$0xff]  ;;  %s1558_s28 = smov 111   ;;  %p1252_p5 = scmp.ne.s32.totalorder %s1590_s16, 2 }
  0x19   : > { %v1648_v15 = vld [vmem:[#allocation2 + $0x18] sm:$0xff]  ;;  %v261_v18 = vadd.f32 %v260_v12, %v1640_v11 }
  0x1a   : > { %v1644_v13 = vld [vmem:[#allocation2 + $0x20] sm:$0xff]  ;;  %v1646_v14 = vld [vmem:[#allocation2 + $0x28] sm:$0xff] }
  0x1b   : > { %v1650_v16 = vld [vmem:[#allocation2 + $0x30] sm:$0xff]  ;;  %v265_v17 = vadd.f32 %v1646_v14, %v1644_v13  ;;  %v1655_v19 = vld [vmem:[#allocation2 + $0x38] sm:$0xff]  ;;  %v262_v21 = vadd.f32 %v261_v18, %v1648_v15  ;;  %v1350_v18 = vpack.i.bf16 %v401_v7, %v398_v6 }
  0x1d   : > { %v266_v20 = vadd.f32 %v265_v17, %v1650_v16  ;;  %263 = vadd.xlane.f32.xlu0 %v262_v21 }
  0x1f   : > { %v267_v22 = vadd.f32 %v266_v20, %v1655_v19  ;;  %v323_v20 = vld [vmem:[%s1604_s24] sm:$0xff] }
  0x21   : > { %268 = vadd.xlane.f32.xlu0 %v267_v22 }
  0xaa   : > { %v264_v23 = vpop.xlane.xlu0 %263 }
  0xab   : > { %v1660_v24 = vmul.f32 0.001953125, %v264_v23  ;;  %v445_v23 = vpack.c.bf16 %v401_v7, %v398_v6  ;;  %v1532_v7 = vld [vmem:[%s1609_s27 + $0x4] ss:$8 sps:$4 sm:$0xff]  }
  0xac   : > { %1251 = vmatprep.mubr.msk.bf16.mxu1 %vm457_vm4, %v1532_v7  ;;  %1250 = vmatprep.mubr.msk.bf16.mxu0 %vm457_vm4, %v1532_v7 }
  0xad   : > { %v273_v25 = vsub.f32 %v1636_v9, %v1660_v24  ;;  %v274_v26 = vsub.f32 %v1638_v10, %v1660_v24  ;;  %v275_v27 = vsub.f32 %v1640_v11, %v1660_v24  ;;  %v276_v29 = vsub.f32 %v1648_v15, %v1660_v24 }
  0xae   : > { %v269_v28 = vpop.xlane.xlu0 %268 }
  0xaf   : > { %v1670_v30 = vmul.f32 0.001953125, %v269_v28  ;;  %v281_v31 = vmul.f32 %v273_v25, %v273_v25  ;;  %v282_v32 = vmul.f32 %v274_v26, %v274_v26  ;;  %v283_v33 = vmul.f32 %v275_v27, %v275_v27  ;;  %v324_v25 = vld [vmem:[%s1604_s24 + $0x8] sm:$0xff]  ;;  %s1555_s24 = smov 127  }
  0xb0   : > { %v284_v38 = vmul.f32 %v276_v29, %v276_v29 }
  0xb1   : > { %v289_v34 = vadd.f32 %v282_v32, %v281_v31  ;;  %v277_v35 = vsub.f32 %v1644_v13, %v1670_v30  ;;  %v278_v36 = vsub.f32 %v1646_v14, %v1670_v30  ;;  %v279_v37 = vsub.f32 %v1650_v16, %v1670_v30 }
  0xb2   : > { %v280_v40 = vsub.f32 %v1655_v19, %v1670_v30 }
  0xb3   : > { %v290_v39 = vadd.f32 %v289_v34, %v283_v33  ;;  %v285_v41 = vmul.f32 %v277_v35, %v277_v35  ;;  %v286_v42 = vmul.f32 %v278_v36, %v278_v36  ;;  %v287_v44 = vmul.f32 %v279_v37, %v279_v37 }
  0xb4   : > { %v288_v46 = vmul.f32 %v280_v40, %v280_v40 }
  0xb5   : > { %v291_v43 = vadd.f32 %v290_v39, %v284_v38  ;;  %v294_v45 = vadd.f32 %v286_v42, %v285_v41 }
  0xb7   : > { %292 = vadd.xlane.f32.xlu1 %v291_v43  ;;  %v295_v47 = vadd.f32 %v294_v45, %v287_v44 }
  0xb9   : > { %v296_v48 = vadd.f32 %v295_v47, %v288_v46 }
  0xbb   : > { %297 = vadd.xlane.f32.xlu1 %v296_v48 }
 0x144   : > { %v293_v50 = vpop.xlane.xlu1 %292 }
 0x145   : > { %v299_v51 = vmul.f32 0.001953125, %v293_v50 }
 0x147   : > { %v303_v52 = vadd.f32 1e-05, %v299_v51 }
 0x148   : > { %v298_v53 = vpop.xlane.xlu1 %297 }
 0x149   : > { %1533 = vrsqrt.f32 %v303_v52  ;;  %v300_v54 = vmul.f32 0.001953125, %v298_v53  ;;  %vm307_vm0 = vcmp.eq.f32.partialorder %v303_v52, inf  ;;  %v310_v58 = vand.u32 2147483648, %v303_v52 }
 0x14a   : > { %vm309_vm1 = vcmp.eq.f32.partialorder %v303_v52, 0.0 }
 0x14b   : > { %v304_v55 = vadd.f32 1e-05, %v300_v54 }
 0x14d   : > { %1535 = vrsqrt.f32 %v304_v55  ;;  %vm314_vm2 = vcmp.eq.f32.partialorder %v304_v55, inf  ;;  %v317_v63 = vand.u32 2147483648, %v304_v55  ;;  %vm316_vm3 = vcmp.eq.f32.partialorder %v304_v55, 0.0 }
 0x153   : > { %v1534_v56 = vpop.eup %1533 }
 0x154   : > { %v306_v57 = vmul.f32 %v1534_v56, %v303_v52  ;;  %v559_v56 = vld [vmem:[#allocation3 + $0x38] sm:$0xff] }
 0x156   : > { %v308_v59 = vsel %vm307_vm0, %v303_v52, %v306_v57  ;;  %vm578_vm0 = vcmask 1039360  }
 0x157   : > { %v1536_v60 = vpop.eup %1535  ;;  %v311_v61 = vsel %vm309_vm1, %v310_v58, %v308_v59  ;;  %v556_v58 = vld [vmem:[#allocation3 + $0x18] sm:$0xff]  ;;  %vm619_vm1 = vcmask 924672  }
 0x158   : > { %v313_v62 = vmul.f32 %v1536_v60, %v304_v55  ;;  %1537 = vrcp.f32 %v311_v61 }
 0x15a   : > { %v315_v0 = vsel %vm314_vm2, %v304_v55, %v313_v62  ;;  %vm654_vm2 = vcmask 916480  }
 0x15b   : > { %v318_v1 = vsel %vm316_vm3, %v317_v63, %v315_v0  ;;  %vm685_vm3 = vcmask 908288  }
 0x15c   : > { %1539 = vrcp.f32 %v318_v1 }
 0x162   : > { %v1538_v3 = vpop.eup %1537 }
 0x163   : > { %v320_v4 = vmul.f32 %v1538_v3, %v301_v2 }
 0x165   : > { %364 = vperm.xlu0 %1348, %v320_v4   ;;  %v325_v17 = vmul.f32 %v320_v4, %v1660_v24 }
 0x166   : > { %v1540_v8 = vpop.eup %1539 }
 0x167   : > { %v322_v12 = vmul.f32 %v1540_v8, %v302_v5  ;;  %v327_v21 = vsub.f32 %v323_v20, %v325_v17  ;;  %v644_v5 = vpack.c.bf16 %v559_v56, %v556_v58 }
 0x169   : > { %369 = vperm.xlu1 %1349, %v322_v12   ;;  %1356 = vrot.lane.b32.xlu0 %v1350_v18, %s1551_s20  ;;  %v326_v22 = vmul.f32 %v322_v12, %v1670_v30 }
 0x16b   : > { %v328_v26 = vsub.f32 %v324_v25, %v326_v22 }
 0x16d   : > { %378 = vperm.xlu1 %1349, %v327_v21   ;;  %852 = vrot.lane.b32.xlu0 %v445_v23, %s1552_s21  ;;  %v331_v21 = vlaneseq }
 0x171   : > { %383 = vperm.xlu1 %1349, %v328_v26   ;;  %1366 = vrot.lane.b32.xlu0 %v1350_v18, %s1553_s22 }
 0x175   : > { %1351 = vrot.lane.b32.xlu1 %v1350_v18, %s1551_s20  ;;  %1376 = vrot.lane.b32.xlu0 %v1350_v18, %s1554_s23 }
 0x179   : > { %451 = vrot.lane.b32.xlu1 %v445_v23, %s1552_s21  ;;  %v332_v23 = vand.u32 127, %v331_v21 }
 0x17b   : > { %v333_v26 = vadd.s32 128, %v332_v23 }
 0x17d   : > { %1361 = vrot.lane.b32.xlu1 %v1350_v18, %s1553_s22 }
 0x181   : > { %1371 = vrot.lane.b32.xlu1 %v1350_v18, %s1554_s23 }
 0x1e4   : > { %v365_v24 = vpop.permute.xlu0 %364 }
 0x1e5   : > { %v372_v28 = vmul.f32 %v365_v24, %v1636_v9  ;;  %v373_v29 = vmul.f32 %v365_v24, %v1638_v10  ;;  %v784_v30 = vmul.f32 %v365_v24, %v1640_v11  ;;  %v785_v31 = vmul.f32 %v365_v24, %v1648_v15 }
 0x1e8   : > { %v370_v27 = vpop.permute.xlu1 %369  ;;  %v1749_v12 = vpop.permute.xlu0 %1356 }
 0x1e9   : > { %v374_v37 = vmul.f32 %v370_v27, %v1644_v13  ;;  %v375_v38 = vmul.f32 %v370_v27, %v1646_v14  ;;  %v786_v39 = vmul.f32 %v370_v27, %v1650_v16  ;;  %v787_v40 = vmul.f32 %v370_v27, %v1655_v19 }
 0x1ec   : > { %v379_v32 = vpop.permute.xlu1 %378  ;;  %v1751_v18 = vpop.permute.xlu0 %852 }
 0x1ed   : > { %v386_v33 = vadd.f32 %v379_v32, %v372_v28  ;;  %v387_v34 = vadd.f32 %v379_v32, %v373_v29  ;;  %v788_v35 = vadd.f32 %v784_v30, %v379_v32  ;;  %v789_v36 = vadd.f32 %v785_v31, %v379_v32 }
 0x1ee   : > { %v345_v28 = vand.u32 15, %v333_v26  ;;  %v338_v29 = vand.u32 15, %v332_v23 }
 0x1ef   : > { %v390_v41 = vmax.f32 %v386_v33, 0.0  ;;  %v391_v42 = vmax.f32 %v387_v34, 0.0  ;;  %v792_v43 = vmax.f32 %v788_v35, 0.0  ;;  %v793_v44 = vmax.f32 %v789_v36, 0.0 }
 0x1f0   : > { %v384_v45 = vpop.permute.xlu1 %383  ;;  %v1755_v22 = vpop.permute.xlu0 %1366  ;;  %vm359_vm5 = vcmp.gt.s32.totalorder %v345_v28, 0  ;;  %vm358_vm7 = vcmp.gt.s32.totalorder %v338_v29, 0  ;;  %vm361_vm11 = vcmp.lt.s32.totalorder %v345_v28, 15  ;;  %vm1796_vm12 = vcmp.lt.s32.totalorder %v338_v29, 15 }
 0x1f1   : > { %v388_v46 = vadd.f32 %v384_v45, %v374_v37  ;;  %v389_v47 = vadd.f32 %v384_v45, %v375_v38  ;;  %v790_v48 = vadd.f32 %v786_v39, %v384_v45  ;;  %v791_v49 = vadd.f32 %v787_v40, %v384_v45  ;;  %vm1765_vm8 = vmpackc.low %vm359_vm5, %vm359_vm5 }
 0x1f2   : > { %v1380_v50 = vpack.i.bf16 %v391_v42, %v390_v41  ;;  %v1410_v59 = vpack.i.bf16 %v556_v58, %v391_v42  ;;  %v1435_v1 = vpack.i.bf16 %v793_v44, %v792_v43  ;;  %v1465_v4 = vpack.i.bf16 %v556_v58, %v793_v44  ;;  %vm1771_vm9 = vmpackc.low %vm358_vm7, %vm358_vm7 }
 0x1f3   : > { %v392_v51 = vmax.f32 %v388_v46, 0.0  ;;  %v393_v52 = vmax.f32 %v389_v47, 0.0  ;;  %v794_v53 = vmax.f32 %v790_v48, 0.0  ;;  %v795_v54 = vmax.f32 %v791_v49, 0.0  ;;  %vm1804_vm13 = vmpackc.low %vm361_vm11, %vm361_vm11 }
 0x1f4   : > { %1381 = vrot.lane.b32.xlu1 %v1380_v50, %s1551_s20  ;;  %v1352_v8 = vpop.permute.xlu1 %1351  ;;  %v1759_v24 = vpop.permute.xlu0 %1376  ;;  %vm1820_vm15 = vmpackc.low %vm1796_vm12, %vm1796_vm12 }
 0x1f5   : > { %v1395_v55 = vpack.i.bf16 %v393_v52, %v392_v51  ;;  %v1415_v57 = vpack.i.bf16 %v559_v56, %v393_v52  ;;  %v1711_v60 = vpack.c.bf16 %v393_v52, %v391_v42  ;;  %v1420_v61 = vpack.i.bf16 %v392_v51, %v390_v41 }
 0x1f6   : > { %v1450_v62 = vpack.i.bf16 %v795_v54, %v794_v53  ;;  %v1718_v63 = vpack.c.bf16 %v392_v51, %v390_v41  ;;  %v1470_v0 = vpack.i.bf16 %v559_v56, %v795_v54  ;;  %v1475_v2 = vpack.i.bf16 %v794_v53, %v792_v43 }
 0x1f7   : > { %1396 = vrot.lane.b32.xlu0 %v1395_v55, %s1553_s22  ;;  %v1729_v3 = vpack.c.bf16 %v795_v54, %v793_v44  ;;  %v1737_v6 = vpack.c.bf16 %v794_v53, %v792_v43  ;;  %v1354_v34 = vunpack.i.h.bf16 %v1352_v8  ;;  %v1353_v35 = vunpack.i.l.bf16 %v1352_v8 }
 0x1f8   : > { %1386 = vrot.lane.b32.xlu1 %v1395_v55, %s1551_s20  ;;  %v452_v17 = vpop.permute.xlu1 %451 }
 0x1fb   : > { %1406 = vrot.lane.b32.xlu0 %v1395_v55, %s1554_s23 }
 0x1fc   : > { %1391 = vrot.lane.b32.xlu1 %v1380_v50, %s1553_s22  ;;  %v1753_v20 = vpop.permute.xlu1 %1361 }
 0x1fd   : > { %v1364_v28 = vunpack.i.h.bf16 %v1753_v20 }
 0x1ff   : > { %1416 = vrot.lane.b32.xlu0 %v1415_v57, %s1555_s24 }
 0x200   : > { %1401 = vrot.lane.b32.xlu1 %v1380_v50, %s1554_s23  ;;  %v1757_v25 = vpop.permute.xlu1 %1371 }
 0x203   : > { %1431 = vrot.lane.b32.xlu0 %v1415_v57, %s1556_s25 }
 0x204   : > { %1411 = vrot.lane.b32.xlu1 %v1410_v59, %s1555_s24 }
 0x207   : > { %455 = vrot.lane.b32.xlu0 %v1711_v60, %s1552_s21 }
 0x208   : > { %1421 = vrot.lane.b32.xlu1 %v1420_v61, %s1555_s24 }
 0x20b   : > { %1451 = vrot.lane.b32.xlu0 %v1450_v62, %s1553_s22 }
 0x20c   : > { %1426 = vrot.lane.b32.xlu1 %v1410_v59, %s1556_s25 }
 0x20f   : > { %1461 = vrot.lane.b32.xlu0 %v1450_v62, %s1554_s23 }
 0x210   : > { %453 = vrot.lane.b32.xlu1 %v1718_v63, %s1552_s21 }
 0x213   : > { %1471 = vrot.lane.b32.xlu0 %v1470_v0, %s1555_s24 }
 0x214   : > { %1436 = vrot.lane.b32.xlu1 %v1435_v1, %s1551_s20 }
 0x217   : > { %1476 = vrot.lane.b32.xlu0 %v1475_v2, %s1555_s24 }
 0x218   : > { %1441 = vrot.lane.b32.xlu1 %v1450_v62, %s1551_s20 }
 0x21b   : > { %1486 = vrot.lane.b32.xlu0 %v1470_v0, %s1556_s25 }
 0x21c   : > { %1446 = vrot.lane.b32.xlu1 %v1435_v1, %s1553_s22 }
 0x21f   : > { %856 = vrot.lane.b32.xlu0 %v1729_v3, %s1552_s21 }
 0x220   : > { %1456 = vrot.lane.b32.xlu1 %v1435_v1, %s1554_s23 }
 0x223   : > { %1496 = vrot.lane.b32.xlu0 %v1475_v2, %s1556_s25 }
 0x224   : > { %1466 = vrot.lane.b32.xlu1 %v1465_v4, %s1555_s24 }
 0x227   : > { %652 = vrot.lane.b32.xlu0 %v644_v5, %s1557_s26 }
 0x228   : > { %1481 = vrot.lane.b32.xlu1 %v1465_v4, %s1556_s25 }
 0x22b   : > { %1048 = vrot.lane.b32.xlu0 %v644_v5, %s1557_s26 }
 0x22c   : > { %854 = vrot.lane.b32.xlu1 %v1737_v6, %s1552_s21 }
 0x22f   : > { %1506 = vrot.lane.b32.xlu0 %v1415_v57, %s1558_s28 }
 0x230   : > { %1491 = vrot.lane.b32.xlu1 %v1420_v61, %s1556_s25 }
 0x233   : > { %1516 = vrot.lane.b32.xlu0 %v1470_v0, %s1558_s28 }
 0x234   : > { %650 = vrot.lane.b32.xlu1 %v1711_v60, %s1557_s26 }
 0x237   : > { %1044 = vrot.lane.b32.xlu0 %v1737_v6, %s1557_s26 }
 0x238   : > { %648 = vrot.lane.b32.xlu1 %v1718_v63, %s1557_s26 }
 0x23b   : > { %1526 = vrot.lane.b32.xlu0 %v1475_v2, %s1558_s28  ;;  %v1363_v2 = vunpack.i.l.bf16 %v1753_v20 }
 0x23c   : > { %1501 = vrot.lane.b32.xlu1 %v1410_v59, %s1558_s28 }
 0x240   : > { %1511 = vrot.lane.b32.xlu1 %v1465_v4, %s1558_s28 }
 0x244   : > { %1046 = vrot.lane.b32.xlu1 %v1729_v3, %s1557_s26 }
 0x248   : > { %1521 = vrot.lane.b32.xlu1 %v1420_v61, %s1558_s28 }
 0x266   : > { %v1382_v27 = vpop.permute.xlu1 %1381 }
 0x267   : > { %v1384_v30 = vunpack.i.h.bf16 %v1382_v27  ;;  %v1383_v31 = vunpack.i.l.bf16 %v1382_v27 }
 0x269   : > { %v1397_v32 = vpop.permute.xlu0 %1396  ;;  %v424_v39 = vsel %vm422_vm6, %v1383_v31, %v1384_v30  ;;  %v423_v42 = vsel %vm422_vm6, %v1353_v35, %v1383_v31 }
 0x26a   : > { %v1387_v33 = vpop.permute.xlu1 %1386  ;;  %v1399_v57 = vunpack.i.h.bf16 %v1397_v32  ;;  %v1398_v58 = vunpack.i.l.bf16 %v1397_v32 }
 0x26b   : > { %v1389_v36 = vunpack.i.h.bf16 %v1387_v33  ;;  %v1388_v37 = vunpack.i.l.bf16 %v1387_v33  ;;  %v1373_v33 = vunpack.i.l.bf16 %v1757_v25 }
 0x26c   : > { %v492_v4 = vsel %vm488_vm10, %v1398_v58, %v1399_v57 }
 0x26d   : > { %v1761_v38 = vpop.permute.xlu0 %1406  ;;  %v426_v40 = vsel %vm422_vm6, %v1388_v37, %v1389_v36  ;;  %v425_v43 = vsel %vm422_vm6, %v1354_v34, %v1388_v37 }
 0x26e   : > { %v1392_v44 = vpop.permute.xlu1 %1391  ;;  %v1259_v45 = vpack.c.bf16 %v426_v40, %v424_v39  ;;  %v1262_v47 = vpack.c.bf16 %v425_v43, %v423_v42  ;;  %v1409_v8 = vunpack.i.h.bf16 %v1761_v38  ;;  %v1408_v21 = vunpack.i.l.bf16 %v1761_v38 }
 0x26f   : > { %v1394_v54 = vunpack.i.h.bf16 %v1392_v44  ;;  %v1393_v55 = vunpack.i.l.bf16 %v1392_v44  ;;  %v1374_v39 = vunpack.i.h.bf16 %v1757_v25  ;;  %v1359_v43 = vunpack.i.h.bf16 %v1749_v12 }
 0x270   : > { %1260 = vmatprep.subr.msk.bf16.mxu0 %vm1765_vm8, %v1259_v45  ;;  %v533_v36 = vsel %vm529_vm14, %v1408_v21, %v1409_v8  ;;  %v1358_v44 = vunpack.i.l.bf16 %v1749_v12 }
 0x271   : > { %1263 = vmatpush1.bf16.msk.msra.mxu0 %vm1771_vm9, %v1262_v47  ;;  %v1779_v48 = vpop.permute.xlu0 %1416  ;;  %v490_v61 = vsel %vm488_vm10, %v1393_v55, %v1394_v54  ;;  %v489_v30 = vsel %vm488_vm10, %v1363_v2, %v1393_v55 }
 0x272   : > { %v1402_v49 = vpop.permute.xlu1 %1401  ;;  %v1265_v29 = vpack.c.bf16 %v492_v4, %v490_v61  ;;  %v1418_v25 = vunpack.i.l.bf16 %v1779_v48 }
 0x273   : > { %v1404_v62 = vunpack.i.h.bf16 %v1402_v49  ;;  %v1403_v0 = vunpack.i.l.bf16 %v1402_v49 }
 0x275   : > { %v1781_v50 = vpop.permute.xlu0 %1431  ;;  %v531_v31 = vsel %vm529_vm14, %v1403_v0, %v1404_v62  ;;  %v530_v40 = vsel %vm529_vm14, %v1373_v33, %v1403_v0 }
 0x276   : > { %v1783_v51 = vpop.permute.xlu1 %1411  ;;  %v1271_v42 = vpack.c.bf16 %v533_v36, %v531_v31 }
 0x277   : > { %v1414_v37 = vunpack.i.h.bf16 %v1783_v51  ;;  %v1413_v38 = vunpack.i.l.bf16 %v1783_v51  ;;  %v1419_v51 = vunpack.i.h.bf16 %v1779_v48 }
 0x279   : > { %v456_v52 = vpop.permute.xlu0 %455  ;;  %v580_v12 = vsel %vm578_vm0, %v1413_v38, %v1414_v37 }
 0x27a   : > { %v1785_v53 = vpop.permute.xlu1 %1421 }
 0x27b   : > { %v1424_v61 = vunpack.i.h.bf16 %v1785_v53  ;;  %v1423_v62 = vunpack.i.l.bf16 %v1785_v53 }
 0x27d   : > { %v1787_v56 = vpop.permute.xlu0 %1451  ;;  %v579_v31 = vsel %vm578_vm0, %v1423_v62, %v1413_v38  ;;  %v581_v33 = vsel %vm578_vm0, %v1424_v61, %v1418_v25  ;;  %v1369_v61 = vunpack.i.h.bf16 %v1755_v22 }
 0x27e   : > { %v1789_v59 = vpop.permute.xlu1 %1426 }
 0x27f   : > { %v1429_v0 = vunpack.i.h.bf16 %v1789_v59  ;;  %v1428_v2 = vunpack.i.l.bf16 %v1789_v59 }
 0x281   : > { %v1792_v1 = vpop.permute.xlu0 %1461 }
 0x282   : > { %v454_v5 = vpop.permute.xlu1 %453 }
 0x283   : > { %v459_v23 = vsel %vm457_vm4, %v454_v5, %v456_v52  ;;  %v458_v26 = vsel %vm457_vm4, %v452_v17, %v454_v5  ;;  %v491_v17 = vsel %vm488_vm10, %v1364_v28, %v1398_v58  ;;  %v532_v52 = vsel %vm529_vm14, %v1374_v39, %v1408_v21 }
 0x284   : > { %735 = vmatprep.subr.bf16.mxu0 %v459_v23  ;;  %v1268_v35 = vpack.c.bf16 %v491_v17, %v489_v30  ;;  %v1274_v55 = vpack.c.bf16 %v532_v52, %v530_v40  ;;  %v1434_v28 = vunpack.i.h.bf16 %v1781_v50  ;;  %v1433_v30 = vunpack.i.l.bf16 %v1781_v50 }
 0x285   : > { %736 = vmatpush1.bf16.msra.mxu0 %v458_v26  ;;  %v1811_v32 = vpop.permute.xlu0 %1471  ;;  %v582_v26 = vsel %vm578_vm0, %v1418_v25, %v1419_v51  ;;  %v1368_v25 = vunpack.i.l.bf16 %v1755_v22 }
 0x286   : > { %v1437_v34 = vpop.permute.xlu1 %1436  ;;  %1266 = vmatprep.subr.msk.bf16.mxu0 %vm1804_vm13, %v1265_v29  ;;  %v1277_v29 = vpack.c.bf16 %v582_v26, %v580_v12  ;;  %v1464_v12 = vunpack.i.h.bf16 %v1792_v1 }
 0x287   : > { %v1439_v45 = vunpack.i.h.bf16 %v1437_v34  ;;  %v1438_v47 = vunpack.i.l.bf16 %v1437_v34  ;;  %v623_v34 = vsel %vm619_vm1, %v1433_v30, %v1434_v28 }
 0x289   : > { %1269 = vmatpush1.bf16.msk.msra.mxu0 %vm1820_vm15, %v1268_v35  ;;  %v1833_v49 = vpop.permute.xlu0 %1476  ;;  %v825_v4 = vsel %vm422_vm6, %v1438_v47, %v1439_v45  ;;  %v824_v7 = vsel %vm422_vm6, %v1358_v44, %v1438_v47  ;;  %v1280_v35 = vpack.c.bf16 %v581_v33, %v579_v31 }
 0x28a   : > { %v1442_v54 = vpop.permute.xlu1 %1441  ;;  %1272 = vmatprep.subr.msk.bf16.mxu0 %vm1765_vm8, %v1271_v42  ;;  %v1454_v42 = vunpack.i.h.bf16 %v1787_v56 }
 0x28b   : > { %v1444_v57 = vunpack.i.h.bf16 %v1442_v54  ;;  %v1443_v58 = vunpack.i.l.bf16 %v1442_v54 }
 0x28d   : > { %1275 = vmatpush1.bf16.msk.msra.mxu0 %vm1771_vm9, %v1274_v55  ;;  %v1847_v48 = vpop.permute.xlu0 %1486  ;;  %v827_v5 = vsel %vm422_vm6, %v1443_v58, %v1444_v57  ;;  %v826_v8 = vsel %vm422_vm6, %v1359_v43, %v1443_v58  ;;  %v1453_v43 = vunpack.i.l.bf16 %v1787_v56  ;;  %v1463_v57 = vunpack.i.l.bf16 %v1792_v1 }
 0x28e   : > { %v1447_v21 = vpop.permute.xlu1 %1446  ;;  %741 = vmatprep.subr.bf16.mxu0 %v1711_v60  ;;  %v1295_v53 = vpack.c.bf16 %v827_v5, %v825_v4  ;;  %v1298_v23 = vpack.c.bf16 %v826_v8, %v824_v7  ;;  %v621_v60 = vsel %vm619_vm1, %v1428_v2, %v1429_v0  ;;  %v1378_v7 = vunpack.i.l.bf16 %v1759_v24 }
 0x28f   : > { %v1283_v36 = vpack.c.bf16 %v623_v34, %v621_v60  ;;  %v1448_v39 = vunpack.i.l.bf16 %v1447_v21  ;;  %v891_v54 = vsel %vm488_vm10, %v1453_v43, %v1454_v42  ;;  %v890_v1 = vsel %vm488_vm10, %v1369_v61, %v1453_v43 }
 0x290   : > { %1296 = vmatprep.subr.msk.bf16.mxu1 %vm1765_vm8, %v1295_v53  ;;  %v1474_v34 = vunpack.i.h.bf16 %v1811_v32  ;;  %v1489_v42 = vunpack.i.h.bf16 %v1847_v48 }
 0x291   : > { %742 = vmatpush1.bf16.msra.mxu0 %v1718_v63  ;;  %1299 = vmatpush1.bf16.msk.msra.mxu1 %vm1771_vm9, %v1298_v23  ;;  %v857_v17 = vpop.permute.xlu0 %856  ;;  %v1449_v63 = vunpack.i.h.bf16 %v1447_v21  ;;  %v888_v62 = vsel %vm488_vm10, %v1368_v25, %v1448_v39  ;;  %v1379_v23 = vunpack.i.h.bf16 %v1759_v24 }
 0x292   : > { %v1457_v50 = vpop.permute.xlu1 %1456  ;;  %1278 = vmatprep.subr.msk.bf16.mxu0 %vm1804_vm13, %v1277_v29  ;;  %v1304_v22 = vpack.c.bf16 %v890_v1, %v888_v62 }
 0x293   : > { %v889_v45 = vsel %vm488_vm10, %v1448_v39, %v1449_v63  ;;  %v1459_v47 = vunpack.i.h.bf16 %v1457_v50  ;;  %v1458_v52 = vunpack.i.l.bf16 %v1457_v50  ;;  %v1478_v39 = vunpack.i.l.bf16 %v1833_v49 }
 0x294   : > { %v1301_v0 = vpack.c.bf16 %v891_v54, %v889_v45 }
 0x295   : > { %1281 = vmatpush1.bf16.msk.msra.mxu0 %vm1820_vm15, %v1280_v35  ;;  %v1872_v37 = vpop.permute.xlu0 %1496  ;;  %v929_v4 = vsel %vm529_vm14, %v1458_v52, %v1459_v47  ;;  %v928_v26 = vsel %vm529_vm14, %v1378_v7, %v1458_v52  ;;  %v1473_v35 = vunpack.i.l.bf16 %v1811_v32  ;;  %v1479_v32 = vunpack.i.h.bf16 %v1833_v49 }
 0x296   : > { %v1874_v38 = vpop.permute.xlu1 %1466  ;;  %1284 = vmatprep.subr.msk.bf16.mxu0 %vm1765_vm8, %v1283_v36  ;;  %v1499_v25 = vunpack.i.h.bf16 %v1872_v37  ;;  %v1498_v54 = vunpack.i.l.bf16 %v1872_v37 }
 0x297   : > { %v1469_v29 = vunpack.i.h.bf16 %v1874_v38  ;;  %v1468_v31 = vunpack.i.l.bf16 %v1874_v38  ;;  %v979_v45 = vsel %vm578_vm0, %v1473_v35, %v1474_v34 }
 0x299   : > { %v653_v40 = vpop.permute.xlu0 %652 }
 0x29a   : > { %v1880_v44 = vpop.permute.xlu1 %1481 }
 0x29b   : > { %v1484_v38 = vunpack.i.h.bf16 %v1880_v44  ;;  %v1483_v63 = vunpack.i.l.bf16 %v1880_v44  ;;  %v976_v44 = vsel %vm578_vm0, %v1478_v39, %v1468_v31 }
 0x29d   : > { %v1883_v51 = vpop.permute.xlu0 %1048  ;;  %v1017_v49 = vsel %vm619_vm1, %v1483_v63, %v1484_v38  ;;  %v1016_v37 = vsel %vm619_vm1, %v1498_v54, %v1483_v63 }
 0x29e   : > { %v855_v55 = vpop.permute.xlu1 %854 }
 0x29f   : > { %v859_v58 = vsel %vm457_vm4, %v855_v55, %v857_v17  ;;  %v858_v56 = vsel %vm457_vm4, %v1751_v18, %v855_v55  ;;  %v931_v18 = vsel %vm529_vm14, %v1463_v57, %v1464_v12  ;;  %v930_v17 = vsel %vm529_vm14, %v1379_v23, %v1463_v57 }
 0x2a0   : > { %1116 = vmatprep.subr.bf16.mxu1 %v859_v58  ;;  %v1307_v28 = vpack.c.bf16 %v931_v18, %v929_v4  ;;  %v1310_v36 = vpack.c.bf16 %v930_v17, %v928_v26 }
 0x2a1   : > { %1117 = vmatpush1.bf16.msra.mxu1 %v858_v56  ;;  %v1895_v5 = vpop.permute.xlu0 %1506 }
 0x2a2   : > { %v1492_v8 = vpop.permute.xlu1 %1491  ;;  %1302 = vmatprep.subr.msk.bf16.mxu1 %vm1804_vm13, %v1301_v0  ;;  %v1509_v55 = vunpack.i.h.bf16 %v1895_v5 }
 0x2a3   : > { %v1494_v21 = vunpack.i.h.bf16 %v1492_v8  ;;  %v1493_v53 = vunpack.i.l.bf16 %v1492_v8 }
 0x2a5   : > { %v620_v33 = vsel %vm619_vm1, %v1493_v53, %v1428_v2  ;;  %v622_v60 = vsel %vm619_vm1, %v1494_v21, %v1433_v30  ;;  %1305 = vmatpush1.bf16.msk.msra.mxu1 %vm1820_vm15, %v1304_v22  ;;  %v1917_v59 = vpop.permute.xlu0 %1516  ;;  %v977_v30 = vsel %vm578_vm0, %v1468_v31, %v1469_v29 }
 0x2a6   : > { %v1286_v24 = vpack.c.bf16 %v622_v60, %v620_v33  ;;  %v651_v50 = vpop.permute.xlu1 %650  ;;  %1308 = vmatprep.subr.msk.bf16.mxu1 %vm1765_vm8, %v1307_v28  ;;  %v1313_v52 = vpack.c.bf16 %v979_v45, %v977_v30  ;;  %v1519_v18 = vunpack.i.h.bf16 %v1917_v59  ;;  %v1518_v22 = vunpack.i.l.bf16 %v1917_v59  ;;  %v1530_v59 = vld [vmem:[%s1609_s27] ss:$8 sps:$4 sm:$0xff]  }
 0x2a7   : > { %v656_v2 = vsel %vm654_vm2, %v651_v50, %v653_v40  ;;  %v1488_v40 = vunpack.i.l.bf16 %v1847_v48  ;;  %v1508_v48 = vunpack.i.l.bf16 %v1895_v5 }
 0x2a8   : > { %1287 = vmatpush1.bf16.msk.msra.mxu0 %vm1771_vm9, %v1286_v24  ;;  %v1083_v31 = vsel %vm685_vm3, %v1518_v22, %v1519_v18 }
 0x2a9   : > { %747 = vmatprep.subr.bf16.mxu0 %v656_v2  ;;  %1311 = vmatpush1.bf16.msk.msra.mxu1 %vm1771_vm9, %v1310_v36  ;;  %v1045_v12 = vpop.permute.xlu0 %1044  ;;  %v1019_v57 = vsel %vm619_vm1, %v1488_v40, %v1489_v42  ;;  %v1018_v4 = vsel %vm619_vm1, %v1499_v25, %v1488_v40  ;;  %v689_v5 = vsel %vm685_vm3, %v1508_v48, %v1509_v55 }
 0x2aa   : > { %v649_v43 = vpop.permute.xlu1 %648  ;;  %1122 = vmatprep.subr.bf16.mxu1 %v1729_v3  ;;  %v978_v3 = vsel %vm578_vm0, %v1479_v32, %v1473_v35  ;;  %v1319_v0 = vpack.c.bf16 %v1019_v57, %v1017_v49  ;;  %v1322_v7 = vpack.c.bf16 %v1018_v4, %v1016_v37 }
 0x2ab   : > { %v655_v47 = vsel %vm654_vm2, %v649_v43, %v651_v50  ;;  %v1316_v56 = vpack.c.bf16 %v978_v3, %v976_v44 }
 0x2ac   : > { %748 = vmatpush1.bf16.msra.mxu0 %v655_v47 }
 0x2ad   : > { %1123 = vmatpush1.bf16.msra.mxu1 %v1737_v6  ;;  %v1527_v21 = vpop.permute.xlu0 %1526 }
 0x2ae   : > { %v1502_v58 = vpop.permute.xlu1 %1501  ;;  %1314 = vmatprep.subr.msk.bf16.mxu1 %vm1804_vm13, %v1313_v52  ;;  %v1529_v28 = vunpack.i.h.bf16 %v1527_v21  ;;  %v1528_v29 = vunpack.i.l.bf16 %v1527_v21 }
 0x2af   : > { %v1504_v61 = vunpack.i.h.bf16 %v1502_v58  ;;  %v1503_v62 = vunpack.i.l.bf16 %v1502_v58 }
 0x2b0   : > { %v1082_v50 = vsel %vm685_vm3, %v1529_v28, %v1518_v22 }
 0x2b1   : > { %v687_v6 = vsel %vm685_vm3, %v1503_v62, %v1504_v61  ;;  %1317 = vmatpush1.bf16.msk.msra.mxu1 %vm1820_vm15, %v1316_v56 }
 0x2b2   : > { %v1289_v1 = vpack.c.bf16 %v689_v5, %v687_v6  ;;  %v1512_v8 = vpop.permute.xlu1 %1511  ;;  %1320 = vmatprep.subr.msk.bf16.mxu1 %vm1765_vm8, %v1319_v0 }
 0x2b3   : > { %v1514_v53 = vunpack.i.h.bf16 %v1512_v8  ;;  %v1513_v23 = vunpack.i.l.bf16 %v1512_v8 }
 0x2b4   : > { %1290 = vmatprep.subr.msk.bf16.mxu0 %vm1804_vm13, %v1289_v1 }
 0x2b5   : > { %v1081_v26 = vsel %vm685_vm3, %v1513_v23, %v1514_v53  ;;  %1323 = vmatpush1.bf16.msk.msra.mxu1 %vm1771_vm9, %v1322_v7  ;;  %v1080_v17 = vsel %vm685_vm3, %v1528_v29, %v1513_v23 }
 0x2b6   : > { %v1047_v41 = vpop.permute.xlu1 %1046  ;;  %v1325_v24 = vpack.c.bf16 %v1083_v31, %v1081_v26  ;;  %v1328_v34 = vpack.c.bf16 %v1082_v50, %v1080_v17 }
 0x2b7   : > { %v1051_v33 = vsel %vm654_vm2, %v1047_v41, %v1883_v51  ;;  %v1050_v60 = vsel %vm654_vm2, %v1045_v12, %v1047_v41 }
 0x2b8   : > { %1128 = vmatprep.subr.bf16.mxu1 %v1051_v33 }
 0x2b9   : > { %1129 = vmatpush1.bf16.msra.mxu1 %v1050_v60 }
 0x2ba   : > { %v1522_v46 = vpop.permute.xlu1 %1521  ;;  %1326 = vmatprep.subr.msk.bf16.mxu1 %vm1804_vm13, %v1325_v24 }
 0x2bb   : > { %v1524_v35 = vunpack.i.h.bf16 %v1522_v46  ;;  %v1523_v36 = vunpack.i.l.bf16 %v1522_v46 }
 0x2bd   : > { %v686_v2 = vsel %vm685_vm3, %v1523_v36, %v1503_v62  ;;  %v688_v51 = vsel %vm685_vm3, %v1524_v35, %v1508_v48  ;;  %1329 = vmatpush1.bf16.msk.msra.mxu1 %vm1820_vm15, %v1328_v34 }
 0x2be   : > { %v1292_v30 = vpack.c.bf16 %v688_v51, %v686_v2 }
 0x2c0   : > { %1293 = vmatpush1.bf16.msk.msra.mxu0 %vm1820_vm15, %v1292_v30  ;;  %1147 = vmatmul.mubr.bf16.vlgmr.msra.gmra.mrb[0].mxu1 %v1530_v59 }
 0x2c3   : > { %766 = vmatmul.mubr.bf16.vlgmr.msra.gmra.mrb[0].mxu0 %v1530_v59 }
 0x393   : > { %v1148_v38 = vpop.f32.mrb[0].mxu1 }
 0x394   : > { %v1157_v27 = vadd.f32 %v1148_v38, %v1640_v11  ;;  %v1150_v63 = vpop.f32.mrb[1].mxu1 }
 0x395   : > { %v1158_v32 = vadd.f32 %v1150_v63, %v1648_v15  ;;  %v1152_v39 = vpop.f32.mrb[2].mxu1 }
 0x396   : > { %1161 = vst [vmem:[#allocation2 + $0x10] sm:$0xff] %v1157_v27  ;;  %v1159_v42 = vadd.f32 %v1152_v39, %v1650_v16  ;;  %v767_v40 = vpop.f32.mrb[0].mxu0  ;;  %v1154_v43 = vpop.f32.mrb[3].mxu1  ;;  %1168 = sbr.rel (%p1252_p5) target bundleno = 933 (0x3a5), region = 44 }
 0x397   : > { %1162 = vst [vmem:[#allocation2 + $0x18] sm:$0xff] %v1158_v32  ;;  %v776_v45 = vadd.f32 %v767_v40, %v1636_v9  ;;  %v1160_v20 = vadd.f32 %v1154_v43, %v1655_v19  ;;  %v769_v47 = vpop.f32.mrb[1].mxu0 }
 0x398   : > { %1163 = vst [vmem:[#allocation2 + $0x30] sm:$0xff] %v1159_v42  ;;  %v777_v44 = vadd.f32 %v769_v47, %v1638_v10  ;;  %v771_v52 = vpop.f32.mrb[2].mxu0 }
 0x399   : > { %780 = vst [vmem:[#allocation2] sm:$0xff] %v776_v45  ;;  %1164 = vst [vmem:[#allocation2 + $0x38] sm:$0xff] %v1160_v20  ;;  %v778_v11 = vadd.f32 %v771_v52, %v1644_v13  ;;  %v773_v15 = vpop.f32.mrb[3].mxu0 }
 0x39a   : > { %781 = vst [vmem:[#allocation2 + $0x8] sm:$0xff] %v777_v44  ;;  %v779_v16 = vadd.f32 %v773_v15, %v1646_v14 }
 0x39b   : > { %782 = vst [vmem:[#allocation2 + $0x20] sm:$0xff] %v778_v11 }
 0x39c   : > { %783 = vst [vmem:[#allocation2 + $0x28] sm:$0xff] %v779_v16 }
 0x39d   : > { %v1171_v25 = vld [vmem:[#allocation2 + $0x10] sm:$0xff] }
 0x39e   : > { %1179 = vst [vmem:[%s2015_s4 + $0x10] sm:$0xff] %v1171_v25  ;;  %v1172_v10 = vld [vmem:[#allocation2 + $0x18] sm:$0xff] }
 0x39f   : > { %1180 = vst [vmem:[%s2015_s4 + $0x18] sm:$0xff] %v1172_v10  ;;  %v1175_v54 = vld [vmem:[#allocation2 + $0x30] sm:$0xff] }
 0x3a0   : > { %v1169_v9 = vld [vmem:[#allocation2] sm:$0xff]  ;;  %v1176_v49 = vld [vmem:[#allocation2 + $0x38] sm:$0xff]  ;;  %1183 = vst [vmem:[%s2015_s4 + $0x30] sm:$0xff] %v1175_v54 }
 0x3a1   : > { %v1170_v19 = vld [vmem:[#allocation2 + $0x8] sm:$0xff]  ;;  %1177 = vst [vmem:[%s2015_s4] sm:$0xff] %v1169_v9  ;;  %1184 = vst [vmem:[%s2015_s4 + $0x38] sm:$0xff] %v1176_v49 }
 0x3a2   : > { %1178 = vst [vmem:[%s2015_s4 + $0x8] sm:$0xff] %v1170_v19  ;;  %v1173_v13 = vld [vmem:[#allocation2 + $0x20] sm:$0xff] }
 0x3a3   : > { %v1174_v14 = vld [vmem:[#allocation2 + $0x28] sm:$0xff]  ;;  %1181 = vst [vmem:[%s2015_s4 + $0x20] sm:$0xff] %v1173_v13 }
 0x3a4   : > { %1182 = vst [vmem:[%s2015_s4 + $0x28] sm:$0xff] %v1174_v14 }
 0x3a5 PF: > { %s14_s15 = sadd.s32 1, %s1547_s15  }
 0x3a6   : > { %p11_p6 = scmp.ge.s32.totalorder %s14_s15, 5  }
 0x3a8   :  { %13 = sbr.rel (!%p11_p6) target bundleno = 1 (0x1), region = 76 }

</bundles_post_ra>
